<compile_context>
chip_gen: v6e
topology: v6e:2x2x1
jax: 0.10.0
libtpu: 0.0.40
codegen_flags: <defaults>
</compile_context>

<pallas_src>
import functools

import jax
import jax.numpy as jnp
from jax.experimental import pallas as pl
from jax.experimental.pallas import tpu as pltpu

IN_FEATURES = 128
OUT_FEATURES = 10
PADDED_OUT = 128                      # lane-dense output slab (unmasked stores)
DROPOUT_P = 0.5                       # F.dropout default
DROPOUT_SCALE = 1.0 / (1.0 - DROPOUT_P)
KEEP_THRESHOLD = int(DROPOUT_P * (1 << 32)) & 0xFFFFFFFF  # 0x80000000 for p=0.5


def _round_up(x, m):
    return (x + m - 1) // m * m


def _hash_u32(x):
    """Cheap stateless uint32 mixer (lowbias32-style); uniform enough for dropout.

    All VPU work; it hides under the x-tile DMA in this bandwidth-bound kernel.
    """
    x = x ^ (x >> jnp.uint32(16))
    x = x * jnp.uint32(0x7FEB352D)
    x = x ^ (x >> jnp.uint32(15))
    x = x * jnp.uint32(0x846CA68B)
    x = x ^ (x >> jnp.uint32(16))
    return x


def _net_classifier_kernel(seed_ref, x_ref, wT_ref, b_ref, o_ref, *,
                           training, block_b):
    """seed_ref: (1,) SMEM (scalar-prefetch); x_ref: (TB,128); wT_ref: (128,128);
    b_ref: (1,128); o_ref: (TB,128). All VMEM, f32."""
    # Linear on the MXU with f32 accumulation; padded lanes of W^T / bias are 0,
    # so lanes 10..127 of y are exactly ReLU(0 + 0) = 0 after the max below.
    y = jnp.dot(x_ref[...], wT_ref[...], preferred_element_type=jnp.float32)
    y = y + b_ref[...]
    # ReLU (VPU)
    y = jnp.maximum(y, 0.0)
    if training:
        # Inverted dropout, p = 0.5: hash(seed, global element index) -> bits,
        # keep iff bits >= p * 2^32 (one unsigned compare + one select / elem).
        seed = seed_ref[0].astype(jnp.uint32)
        row0 = (pl.program_id(0) * block_b).astype(jnp.uint32)
        rows = jax.lax.broadcasted_iota(jnp.int32, y.shape, 0).astype(jnp.uint32)
        cols = jax.lax.broadcasted_iota(jnp.int32, y.shape, 1).astype(jnp.uint32)
        gidx = (row0 + rows) * jnp.uint32(PADDED_OUT) + cols
        bits = _hash_u32(gidx ^ (seed * jnp.uint32(0x9E3779B9)))
        keep = bits >= jnp.uint32(KEEP_THRESHOLD)
        y = jnp.where(keep, y * DROPOUT_SCALE, 0.0)
    o_ref[...] = y.astype(o_ref.dtype)


def net_classifier_forward(x, weight, bias, *, training=True, seed=0, block_b=1024):
    """x: (B, 128) f32; weight: (10, 128) f32; bias: (10,) f32 -> (B, 10) f32.

    Note: for tiny batches (tens of rows) this is pure launch overhead and plain
    jnp would do equally well; the tiling pays off for B in the thousands.
    """
    B = x.shape[0]
    assert x.shape[1] == IN_FEATURES

    # Batch tile: multiple of 8 sublanes, capped at block_b; pad B to a multiple.
    TB = min(block_b, _round_up(max(B, 1), 8))
    Bp = _round_up(B, TB)
    x = x.astype(jnp.float32)
    if Bp != B:
        x = jnp.pad(x, ((0, Bp - B), (0, 0)))

    # Lane-dense (zero-padded) weight / bias -> 128-wide output slab.
    wT = jnp.pad(weight.astype(jnp.float32).T,
                 ((0, 0), (0, PADDED_OUT - OUT_FEATURES)))
    b2d = jnp.pad(bias.astype(jnp.float32).reshape(1, OUT_FEATURES),
                  ((0, 0), (0, PADDED_OUT - OUT_FEATURES)))
    seed_arr = jnp.asarray([seed], dtype=jnp.int32)

    grid = (Bp // TB,)
    kernel = functools.partial(_net_classifier_kernel, training=training, block_b=TB)
    cost = pl.CostEstimate(
        flops=2 * Bp * IN_FEATURES * OUT_FEATURES,
        transcendentals=0,
        bytes_accessed=(Bp * IN_FEATURES * 4          # read x
                        + Bp * PADDED_OUT * 4         # write padded output
                        + IN_FEATURES * PADDED_OUT * 4
                        + PADDED_OUT * 4),
    )

    out_padded = pl.pallas_call(
        kernel,
        out_shape=jax.ShapeDtypeStruct((Bp, PADDED_OUT), jnp.float32),
        grid_spec=pltpu.PrefetchScalarGridSpec(
            num_scalar_prefetch=1,                    # seed lives in SMEM
            grid=grid,
            in_specs=[
                pl.BlockSpec((TB, IN_FEATURES), lambda i, seed_ref: (i, 0)),          # x tile
                pl.BlockSpec((IN_FEATURES, PADDED_OUT), lambda i, seed_ref: (0, 0)),  # W^T pinned
                pl.BlockSpec((1, PADDED_OUT), lambda i, seed_ref: (0, 0)),            # bias pinned
            ],
            out_specs=pl.BlockSpec((TB, PADDED_OUT), lambda i, seed_ref: (i, 0)),
        ),
        compiler_params=pltpu.CompilerParams(
            dimension_semantics=("parallel",),        # v7x: shard batch tiles over both TCs
        ),
        cost_estimate=cost,
    )(seed_arr, x, wT, b2d)

    return out_padded[:B, :OUT_FEATURES]


def init_params(key):
    """Deterministic init mimicking nn.Linear's default uniform(-1/sqrt(fan_in), ...)."""
    kw, kb = jax.random.split(key)
    bound = 1.0 / (IN_FEATURES ** 0.5)
    weight = jax.random.uniform(
        kw, (OUT_FEATURES, IN_FEATURES), jnp.float32, -bound, bound
    )
    bias = jax.random.uniform(kb, (OUT_FEATURES,), jnp.float32, -bound, bound)
    return weight, bias


if __name__ == "__main__":
    key = jax.random.PRNGKey(0)
    kx, kp = jax.random.split(key)
    B = 8
    x = jax.random.normal(kx, (B, IN_FEATURES), dtype=jnp.float32)
    weight, bias = init_params(kp)

    # Training-mode forward (fresh nn.Module is in training mode -> dropout active).
    out_train = jax.block_until_ready(
        net_classifier_forward(x, weight, bias, training=True, seed=123))

    # Eval-mode forward (dropout = identity) + pure-JAX reference check.
    out_eval = jax.block_until_ready(
        net_classifier_forward(x, weight, bias, training=False))
    ref = jnp.maximum(x @ weight.T + bias, 0.0)

    assert out_train.shape == (B, OUT_FEATURES)
    assert out_eval.shape == (B, OUT_FEATURES)
    assert jnp.allclose(out_eval, ref, atol=1e-5, rtol=1e-5)
    # Dropout semantics: each surviving activation is 2x the ReLU output, dropped are 0.
    assert bool(jnp.all((out_train == 0.0)
                        | jnp.isclose(out_train, 2.0 * ref, atol=1e-5, rtol=1e-5)))

    print("KERNEL_OK")
</pallas_src>

<mosaic_0001>
module attributes {stable_mosaic.version = 11 : i64} {
  func.func @_net_classifier_kernel(%arg0: i32, %arg1: memref<1xi32, #tpu.memory_space<smem>>, %arg2: memref<8x128xf32, #tpu.memory_space<vmem>>, %arg3: memref<128x128xf32, #tpu.memory_space<vmem>>, %arg4: memref<1x128xf32, #tpu.memory_space<vmem>>, %arg5: memref<8x128xf32, #tpu.memory_space<vmem>>) attributes {dimension_semantics = [#tpu.dimension_semantics<parallel>], iteration_bounds = array<i64: 1>, scalar_prefetch = 1 : i64, scratch_operands = 0 : i64, tpu.core_type = #tpu.core_type<tc>, window_params = [{transform_indices = @transform_0, window_bounds = array<i64: 8, 128>}, {pipeline_mode = #tpu.pipeline_mode<synchronous>, transform_indices = @transform_1, window_bounds = array<i64: 128, 128>}, {pipeline_mode = #tpu.pipeline_mode<synchronous>, transform_indices = @transform_2, window_bounds = array<i64: 1, 128>}, {transform_indices = @transform_3, window_bounds = array<i64: 8, 128>}]} {
    %c0 = arith.constant 0 : index
    %c0_0 = arith.constant 0 : index
    %0 = vector.load %arg2[%c0, %c0_0] : memref<8x128xf32, #tpu.memory_space<vmem>>, vector<8x128xf32>
    %c0_1 = arith.constant 0 : index
    %c0_2 = arith.constant 0 : index
    %1 = vector.load %arg3[%c0_1, %c0_2] : memref<128x128xf32, #tpu.memory_space<vmem>>, vector<128x128xf32>
    %cst = arith.constant dense<0.000000e+00> : vector<8x128xf32>
    %2 = tpu.matmul %0, %1, %cst {dimension_numbers = #tpu.dot_dimension_numbers<[1], [0], [0], [1], [0, 0, 1, 1], [], []>} : vector<8x128xf32>, vector<128x128xf32>, vector<8x128xf32> -> vector<8x128xf32>
    %c0_3 = arith.constant 0 : index
    %c0_4 = arith.constant 0 : index
    %3 = vector.load %arg4[%c0_3, %c0_4] : memref<1x128xf32, #tpu.memory_space<vmem>>, vector<1x128xf32>
    %4 = vector.broadcast %3 : vector<1x128xf32> to vector<8x128xf32>
    %5 = arith.addf %2, %4 : vector<8x128xf32>
    %cst_5 = arith.constant 0.000000e+00 : f32
    %6 = vector.broadcast %cst_5 : f32 to vector<8x128xf32>
    %7 = arith.maximumf %5, %6 : vector<8x128xf32>
    %c0_6 = arith.constant 0 : index
    %8 = memref.load %arg1[%c0_6] : memref<1xi32, #tpu.memory_space<smem>>
    %c8_i32 = arith.constant 8 : i32
    %9 = arith.muli %arg0, %c8_i32 : i32
    %10 = tpu.iota {dimensions = array<i32: 0>} : vector<8x128xi32>
    %11 = tpu.iota {dimensions = array<i32: 1>} : vector<8x128xi32>
    %12 = vector.broadcast %9 : i32 to vector<8x128xi32>
    %13 = arith.addi %12, %10 : vector<8x128xi32>
    %c128_i32 = arith.constant 128 : i32
    %14 = vector.broadcast %c128_i32 : i32 to vector<8x128xi32>
    %15 = arith.muli %13, %14 : vector<8x128xi32>
    %16 = arith.addi %15, %11 : vector<8x128xi32>
    %c-1640531527_i32 = arith.constant -1640531527 : i32
    %17 = arith.muli %8, %c-1640531527_i32 : i32
    %18 = vector.broadcast %17 : i32 to vector<8x128xi32>
    %19 = arith.xori %16, %18 : vector<8x128xi32>
    %c16_i32 = arith.constant 16 : i32
    %20 = vector.broadcast %c16_i32 : i32 to vector<8x128xi32>
    %21 = arith.shrui %19, %20 : vector<8x128xi32>
    %22 = arith.xori %19, %21 : vector<8x128xi32>
    %c2146121005_i32 = arith.constant 2146121005 : i32
    %23 = vector.broadcast %c2146121005_i32 : i32 to vector<8x128xi32>
    %24 = arith.muli %22, %23 : vector<8x128xi32>
    %c15_i32 = arith.constant 15 : i32
    %25 = vector.broadcast %c15_i32 : i32 to vector<8x128xi32>
    %26 = arith.shrui %24, %25 : vector<8x128xi32>
    %27 = arith.xori %24, %26 : vector<8x128xi32>
    %c-2073254261_i32 = arith.constant -2073254261 : i32
    %28 = vector.broadcast %c-2073254261_i32 : i32 to vector<8x128xi32>
    %29 = arith.muli %27, %28 : vector<8x128xi32>
    %c16_i32_7 = arith.constant 16 : i32
    %30 = vector.broadcast %c16_i32_7 : i32 to vector<8x128xi32>
    %31 = arith.shrui %29, %30 : vector<8x128xi32>
    %32 = arith.xori %29, %31 : vector<8x128xi32>
    %c-2147483648_i32 = arith.constant -2147483648 : i32
    %33 = vector.broadcast %c-2147483648_i32 : i32 to vector<8x128xi32>
    %34 = arith.cmpi uge, %32, %33 : vector<8x128xi32>
    %cst_8 = arith.constant 2.000000e+00 : f32
    %35 = vector.broadcast %cst_8 : f32 to vector<8x128xf32>
    %36 = arith.mulf %7, %35 : vector<8x128xf32>
    %cst_9 = arith.constant 0.000000e+00 : f32
    %37 = vector.broadcast %cst_9 : f32 to vector<8x128xf32>
    %38 = arith.select %34, %36, %37 : vector<8x128xi1>, vector<8x128xf32>
    %c0_10 = arith.constant 0 : index
    %c0_11 = arith.constant 0 : index
    %39 = vector.load %arg5[%c0_10, %c0_11] : memref<8x128xf32, #tpu.memory_space<vmem>>, vector<8x128xf32>
    tpu.vector_store %arg5[%c0_10, %c0_11], %38 {strides = array<i32>} : memref<8x128xf32, #tpu.memory_space<vmem>>, vector<8x128xf32>,
    return
  }
  func.func @transform_0(%arg0: i32, %arg1: memref<1xi32, #tpu.memory_space<smem>>) -> (i32, i32) {
    %c0_i32 = arith.constant 0 : i32
    %c0_i32_0 = arith.constant 0 : i32
    return %arg0, %c0_i32 : i32, i32
  }
  func.func @transform_1(%arg0: i32, %arg1: memref<1xi32, #tpu.memory_space<smem>>) -> (i32, i32) {
    %c0_i32 = arith.constant 0 : i32
    %c0_i32_0 = arith.constant 0 : i32
    %c0_i32_1 = arith.constant 0 : i32
    return %c0_i32, %c0_i32_0 : i32, i32
  }
  func.func @transform_2(%arg0: i32, %arg1: memref<1xi32, #tpu.memory_space<smem>>) -> (i32, i32) {
    %c0_i32 = arith.constant 0 : i32
    %c0_i32_0 = arith.constant 0 : i32
    %c0_i32_1 = arith.constant 0 : i32
    return %c0_i32, %c0_i32_0 : i32, i32
  }
  func.func @transform_3(%arg0: i32, %arg1: memref<1xi32, #tpu.memory_space<smem>>) -> (i32, i32) {
    %c0_i32 = arith.constant 0 : i32
    %c0_i32_0 = arith.constant 0 : i32
    return %arg0, %c0_i32 : i32, i32
  }
}

</mosaic_0001>

<bundles_post_ra>
// kernel: tpu_custom_call.1
= control target key start
LH: loop header
LB: loop body
LE: loop exit
PB: predicated region body
PF: predicated region fallthrough
CT: control target
= control target key end

     0   :  { %10 = vsyncpa [#allocation5], 0  ;;  %s352_s0 = inlined_call_operand.<no memory space> [shape: s32[1], index: 0, kind: input, shape index: {}]   ;;  %s353_s1 = inlined_call_operand.hbm [shape: f32[8,128], index: 1, kind: input, shape index: {}]   ;;  %s354_s2 = inlined_call_operand.hbm [shape: f32[128,128], index: 2, kind: input, shape index: {}]   ;;  %s355_s3 = inlined_call_operand.vmem [shape: f32[1,128], index: 3, kind: input, shape index: {}]   ;;  %s356_s4 = inlined_call_operand.hbm [shape: f32[8,128], index: 4, kind: output, shape index: {}]  }
   0x1   :  { %11 = vsyncpa [#allocation8], 0 }
   0x2   :  { %12 = vsyncpa [#allocation6], 0  ;;  %s305_s15 = smov [#allocation4]   ;;  %s306_s17 = smov [#allocation7]  }
   0x3   :  { %s19_s16 = sshll.u32 %s305_s15, 4  ;;  %s28_s18 = sshll.u32 %s306_s17, 4  ;;  %s20_s16 = int_to_ptr.vmem [resolvable:$true] %s19_s16  ;;  %s29_s18 = int_to_ptr.vmem [resolvable:$true] %s28_s18 }
   0x4   :  { %s247_s19 = scalar_lea.vmem %s20_s16, 128  ;;  %p252_p1 = scmp.lt.s32.totalorder %s20_s16, %s20_s16 }
   0x5   :  { %p248_p0 = scmp.ne.s32.totalorder %s20_s16, %s247_s19  ;;  %p253_p2 = scmp.lt.s32.totalorder %s247_s19, %s247_s19 }
   0x7   :  { %p254_p3 = por %p253_p2, %p252_p1 }
   0x9   :  { %p255_p4 = pnand %p254_p3, %p248_p0 }
   0xb   :  { %258 = shalt.err (!%p255_p4)
}
   0xc   :  { %22 = dma.hbm_to_vmem [thread:$0]  %s353_s1, 128, %s20_s16, [#allocation5]  }
   0xd   :  { %s267_s22 = scalar_lea.vmem %s29_s18, 2048  ;;  %p272_p6 = scmp.lt.s32.totalorder %s29_s18, %s29_s18 }
   0xe   :  { %p268_p5 = scmp.ne.s32.totalorder %s29_s18, %s267_s22  ;;  %p273_p7 = scmp.lt.s32.totalorder %s267_s22, %s267_s22 }
  0x10   :  { %p274_p8 = por %p273_p7, %p272_p6 }
  0x12   :  { %p275_p9 = pnand %p274_p8, %p268_p5 }
  0x14   :  { %278 = shalt.err (!%p275_p9)
}
  0x15   :  { %s307_s23 = smov 128   ;;  %s308_s24 = smov 8  }
  0x16   :  { %34 = dma.hbm_to_vmem [thread:$0]  %s354_s2, 2048, %s29_s18, [#allocation8], %s307_s23, %s307_s23, %s308_s24  }
  0x17   :  { %299 = dma.done.wait [#allocation5], 128  }
  0x18   :  { %300 = vsyncadd [#allocation5], 4294967168 }
  0x19   :  { %301 = dma.done.wait [#allocation8], 2048  }
  0x1a   :  { %302 = vsyncadd [#allocation8], 4294965248  ;;  %v309_v0 = vmov 0.0   ;;  %vm310_vm0 = vmmov 0   ;;  %v59_v1 = vld [vmem:[#allocation7 + $0x78] sm:$0xff]  ;;  %v58_v2 = vld [vmem:[#allocation7 + $0x70] sm:$0xff]  ;;  %v140_v18 = vlaneseq }
  0x1b   :  { %197 = vmatprep.subr.mxu0 %v309_v0  ;;  %229 = vmatprep.mubr.msk.f32.mxu0 %vm310_vm0, %v309_v0  ;;  %v57_v3 = vld [vmem:[#allocation7 + $0x68] sm:$0xff]  ;;  %v56_v4 = vld [vmem:[#allocation7 + $0x60] sm:$0xff]  ;;  %v55_v5 = vld [vmem:[#allocation7 + $0x58] sm:$0xff]  ;;  %s148_s27 = smul.u32 2654435769, %s352_s0  ;;  %s311_s0 = smov [#allocation9]  }
  0x1c   :  { %198 = vmatpush3.msra.mxu0 %v59_v1  ;;  %v54_v6 = vld [vmem:[#allocation7 + $0x50] sm:$0xff]  ;;  %v53_v7 = vld [vmem:[#allocation7 + $0x48] sm:$0xff]  ;;  %v52_v8 = vld [vmem:[#allocation7 + $0x40] sm:$0xff]  ;;  %v141_v19 = vshrl.u32 %v140_v18, 7  ;;  %v143_v20 = vand.u32 127, %v140_v18  ;;  %s169_s30 = sshll.u32 %s311_s0, 4  ;;  %s170_s30 = int_to_ptr.vmem [resolvable:$true] %s169_s30 }
  0x1d   :  { %199 = vmatprep.subr.mxu0 %v309_v0  ;;  %v51_v9 = vld [vmem:[#allocation7 + $0x38] sm:$0xff]  ;;  %v50_v10 = vld [vmem:[#allocation7 + $0x30] sm:$0xff]  ;;  %v49_v11 = vld [vmem:[#allocation7 + $0x28] sm:$0xff]  ;;  %v149_v23 = vstv %s148_s27  ;;  %s279_s5 = scalar_lea.vmem %s170_s30, 128  ;;  %p284_p11 = scmp.lt.s32.totalorder %s170_s30, %s170_s30 }
  0x1e   :  { %200 = vmatpush3.msra.mxu0 %v58_v2  ;;  %v48_v12 = vld [vmem:[#allocation7 + $0x20] sm:$0xff]  ;;  %v47_v13 = vld [vmem:[#allocation7 + $0x18] sm:$0xff]  ;;  %v46_v14 = vld [vmem:[#allocation7 + $0x10] sm:$0xff]  ;;  %v146_v21 = vmul.u32 128, %v141_v19  ;;  %p280_p10 = scmp.ne.s32.totalorder %s170_s30, %s279_s5  ;;  %p285_p12 = scmp.lt.s32.totalorder %s279_s5, %s279_s5 }
  0x1f   :  { %201 = vmatprep.subr.mxu0 %v309_v0  ;;  %v45_v15 = vld [vmem:[#allocation7 + $0x8] sm:$0xff]  ;;  %v44_v16 = vld [vmem:[#allocation7] sm:$0xff]  ;;  %v43_v17 = vld [vmem:[#allocation4] sm:$0xff] }
  0x20   :  { %202 = vmatpush3.msra.mxu0 %v57_v3  ;;  %v147_v22 = vadd.s32 %v146_v21, %v143_v20  ;;  %v179_v32 = vld [vmem:[%s355_s3] ss:$0 sm:$0xff]  ;;  %p286_p13 = por %p285_p12, %p284_p11 }
  0x21   :  { %203 = vmatprep.subr.mxu0 %v309_v0 }
  0x22   :  { %204 = vmatpush3.msra.mxu0 %v56_v4  ;;  %v150_v24 = vxor.u32 %v149_v23, %v147_v22  ;;  %p287_p0 = pnand %p286_p13, %p280_p10 }
  0x23   :  { %205 = vmatprep.subr.mxu0 %v309_v0 }
  0x24   :  { %206 = vmatpush3.msra.mxu0 %v55_v5  ;;  %v151_v25 = vshrl.u32 %v150_v24, 16 }
  0x25   :  { %207 = vmatprep.subr.mxu0 %v309_v0 }
  0x26   :  { %208 = vmatpush3.msra.mxu0 %v54_v6  ;;  %v152_v26 = vxor.u32 %v151_v25, %v150_v24 }
  0x27   :  { %209 = vmatprep.subr.mxu0 %v309_v0 }
  0x28   :  { %210 = vmatpush3.msra.mxu0 %v53_v7  ;;  %v153_v27 = vmul.u32 2146121005, %v152_v26 }
  0x29   :  { %211 = vmatprep.subr.mxu0 %v309_v0 }
  0x2a   :  { %212 = vmatpush3.msra.mxu0 %v52_v8  ;;  %v154_v28 = vshrl.u32 %v153_v27, 15 }
  0x2b   :  { %213 = vmatprep.subr.mxu0 %v309_v0 }
  0x2c   :  { %214 = vmatpush3.msra.mxu0 %v51_v9  ;;  %v155_v29 = vxor.u32 %v154_v28, %v153_v27 }
  0x2d   :  { %215 = vmatprep.subr.mxu0 %v309_v0 }
  0x2e   :  { %216 = vmatpush3.msra.mxu0 %v50_v10  ;;  %v156_v30 = vmul.u32 2221713035, %v155_v29 }
  0x2f   :  { %217 = vmatprep.subr.mxu0 %v309_v0 }
  0x30   :  { %218 = vmatpush3.msra.mxu0 %v49_v11  ;;  %v157_v31 = vshrl.u32 %v156_v30, 16 }
  0x31   :  { %219 = vmatprep.subr.mxu0 %v309_v0 }
  0x32   :  { %220 = vmatpush3.msra.mxu0 %v48_v12  ;;  %v158_v34 = vxor.u32 %v157_v31, %v156_v30 }
  0x33   :  { %221 = vmatprep.subr.mxu0 %v309_v0 }
  0x34   :  { %222 = vmatpush3.msra.mxu0 %v47_v13  ;;  %vm159_vm1 = vcmp.ge.u32.totalorder %v158_v34, 2147483648 }
  0x35   :  { %223 = vmatprep.subr.mxu0 %v309_v0 }
  0x36   :  { %224 = vmatpush3.msra.mxu0 %v46_v14 }
  0x37   :  { %225 = vmatprep.subr.mxu0 %v309_v0 }
  0x38   :  { %226 = vmatpush3.msra.mxu0 %v45_v15 }
  0x39   :  { %227 = vmatprep.subr.mxu0 %v309_v0 }
  0x3a   :  { %228 = vmatpush3.msra.mxu0 %v44_v16 }
  0x3b   :  { %230 = vmatmul.mubr.f32.vlgmr.msra.gmra.mxu0 %v43_v17 }
  0xfb   :  { %v133_v33 = vpop.f32.mrf.mxu0 }
  0xfc   :  { %v134_v35 = vadd.f32 %v179_v32, %v133_v33 }
  0xfd   :  { %v231_v36 = vpop.f32.mrf.mxu0 }
  0xfe   :  { %v137_v37 = vmax.f32 %v134_v35, 0.0 }
 0x100   :  { %v160_v38 = vmul.f32 2.0, %v137_v37 }
 0x102   :  { %v161_v39 = vsel %vm159_vm1, %v160_v38, 0.0 }
 0x103   :  { %162 = vst [vmem:[#allocation9] sm:$0xff] %v161_v39 }
 0x104   :  { %290 = shalt.err (!%p287_p0)
}
 0x105   :  { %172 = dma.vmem_to_hbm [thread:$0]  %s170_s30, 128, %s356_s4, [#allocation6]  }
 0x106   :  { %303 = dma.done.wait [#allocation6], 128  }
 0x107   :  { %304 = vsyncadd [#allocation6], 4294967168 }
 0x108   :  { %176 = vsyncpa [#allocation5], 1 }
 0x109   :  { %177 = vsyncpa [#allocation8], 1 }
 0x10a   :  { %178 = vsyncpa [#allocation6], 1 }

</bundles_post_ra>
